<compile_context>
chip_gen: v7x
topology: tpu7x:2x2x1
jax: 0.10.0
libtpu: 0.0.40
codegen_flags: <defaults>
</compile_context>

<pallas_src>
import functools
import math

import jax
import jax.numpy as jnp
from jax.experimental import pallas as pl
from jax.experimental.pallas import tpu as pltpu


def _cdiv(a, b):
    return -(-a // b)


def _round_up(x, m):
    return _cdiv(x, m) * m


def _lcm(a, b):
    return a * b // math.gcd(a, b)


# --------------------------- kernel ------------------------------------------

def _edge_kernel(xu_ref, xv_ref, r0_ref, r1_ref, out_ref, *,
                 out_cols, symmetric, compute_dtype, tanh_dtype):
    """Grouped edge-weight kernel (everything lane-dense).

    xu_ref, xv_ref : [block_rows, g*C_in]   g consecutive edges packed per row
    r0_ref, r1_ref : [g*C_in, cols]         resident block-diagonal weights
    out_ref        : [block_rows, g*C_out]
    """
    xu = xu_ref[...]
    xv = xv_ref[...]
    r0 = r0_ref[...]
    r1 = r1_ref[...]
    if compute_dtype is not None:
        xu = xu.astype(compute_dtype)
        xv = xv.astype(compute_dtype)
        r0 = r0.astype(compute_dtype)
        r1 = r1.astype(compute_dtype)

    # symmetric: r0 = [BD(Wa^T) | BD(Wb^T)], r1 = [BD(Wb^T) | BD(Wa^T)], so one
    # widened matmul per operand yields BOTH argument orderings at once:
    #   pre[:, :out_cols] == grouped cat([x_u, x_v], 1) @ W.T
    #   pre[:, out_cols:] == grouped cat([x_v, x_u], 1) @ W.T
    pre = (jnp.dot(xu, r0, preferred_element_type=jnp.float32)
           + jnp.dot(xv, r1, preferred_element_type=jnp.float32))

    if tanh_dtype is not None:
        # bf16 tanh for v6e/v7x (bf16-capable EUP); product stays f32.
        res = jnp.tanh(pre.astype(tanh_dtype)).astype(jnp.float32)
    else:
        res = jnp.tanh(pre)

    if symmetric:
        out = res[:, :out_cols] * res[:, out_cols:]   # split on 128-lane boundary
    else:
        out = res
    out_ref[...] = out.astype(out_ref.dtype)


# --------------------------- wrapper ------------------------------------------

def diagonal_edge_weight_builder(x_u, x_v, weight, *, symmetric,
                                 block_edges=None, compute_dtype=None,
                                 tanh_dtype=None):
    """Pallas TPU forward of DiagonalEdgeWeightBuilder.

    x_u, x_v      : [N, C_in]           edge endpoint features (row-major).
    weight        : [C_out, 2*C_in]     nn.Linear(2*C_in, C_out, bias=False).
    symmetric     : multiply with the (x_v, x_u)-ordered branch.
    block_edges   : optional edges per grid step (default: auto, ~32K).
    compute_dtype : optional matmul operand dtype (e.g. jnp.bfloat16); f32 acc.
    tanh_dtype    : optional tanh dtype (jnp.bfloat16 on v6e/v7x); f32 product.
    Returns [N, C_out] in x_u.dtype.
    """
    n, c_in = x_u.shape
    c_out = weight.shape[0]
    assert weight.shape == (c_out, 2 * c_in)
    assert x_v.shape == (n, c_in)

    out_dtype = x_u.dtype
    itemsize = jnp.dtype(out_dtype).itemsize
    sub = {4: 8, 2: 16, 1: 32}.get(itemsize, 8)     # dtype-aware sublane granule

    # Group factor: pack g consecutive edges per row so that both the grouped
    # input row (g*C_in) and grouped output row (g*C_out) are lane-dense.
    g = _lcm(128 // math.gcd(128, c_in), 128 // math.gcd(128, c_out))
    in_cols = g * c_in
    out_cols = g * c_out
    acc_cols = (2 if symmetric else 1) * out_cols

    # Block-diagonal grouped weights (tiny, built once): OutG = XuG @ kron(I, Wa^T) + XvG @ kron(I, Wb^T).
    wa_t = weight[:, :c_in].T                       # [C_in, C_out]
    wb_t = weight[:, c_in:].T
    eye = jnp.eye(g, dtype=weight.dtype)
    bda = jnp.kron(eye, wa_t)                       # [g*C_in, g*C_out]
    bdb = jnp.kron(eye, wb_t)
    if symmetric:
        r0 = jnp.concatenate([bda, bdb], axis=1)    # [g*C_in, 2*g*C_out]
        r1 = jnp.concatenate([bdb, bda], axis=1)
    else:
        r0, r1 = bda, bdb

    # Grouped row-major views.  When n % g == 0 the reshape is a free bitcast;
    # otherwise we pad by < g rows (an XLA copy; supply g-aligned N to avoid it).
    n_pad = _round_up(n, g)
    xu, xv = x_u, x_v
    if n_pad != n:
        pad = ((0, n_pad - n), (0, 0))
        xu = jnp.pad(xu, pad)
        xv = jnp.pad(xv, pad)
    rows = n_pad // g
    xu_g = xu.reshape(rows, in_cols)
    xv_g = xv.reshape(rows, in_cols)

    # Tile size (in grouped rows): big enough to amortize per-grid-step
    # overhead (multi-MB HBM payload), but keep >= ~8 grid steps when there is
    # enough work so the "parallel" axis can shard across TensorCores.
    per_row_bytes = g * (2 * c_in + c_out) * itemsize
    if block_edges is None:
        payload_budget = 4 << 20
        br = min(2048, max(sub, payload_budget // max(per_row_bytes, 1)))
        br = min(br, max(sub, _cdiv(rows, 8)))
    else:
        br = max(sub, _cdiv(int(block_edges), g))
    br = min(br, max(sub, _round_up(rows, sub)))
    block_rows = max(sub, (br // sub) * sub)
    grid = (_cdiv(rows, block_rows),)               # partial last block is masked

    # VMEM limit from the real footprint: double-buffered x/out tiles, resident
    # weights, and the f32 intermediates (pre / res / product).
    w_item = jnp.dtype(weight.dtype).itemsize
    est = (2 * 2 * block_rows * in_cols * itemsize      # xu + xv, double-buffered
           + 2 * block_rows * out_cols * itemsize       # out tile, double-buffered
           + 2 * 2 * in_cols * acc_cols * w_item        # r0 + r1
           + 3 * block_rows * acc_cols * 4              # f32 pre / res / product
           + (1 << 20))
    vmem_limit = int(min(max(2 * est, 24 << 20), 56 << 20))

    kernel = functools.partial(_edge_kernel, out_cols=out_cols,
                               symmetric=symmetric,
                               compute_dtype=compute_dtype,
                               tanh_dtype=tanh_dtype)

    out_g = pl.pallas_call(
        kernel,
        out_shape=jax.ShapeDtypeStruct((rows, out_cols), out_dtype),
        grid_spec=pltpu.PrefetchScalarGridSpec(
            num_scalar_prefetch=0,
            grid=grid,
            in_specs=[
                pl.BlockSpec((block_rows, in_cols), lambda i: (i, 0)),   # x_u grouped tile
                pl.BlockSpec((block_rows, in_cols), lambda i: (i, 0)),   # x_v grouped tile
                pl.BlockSpec((in_cols, acc_cols), lambda i: (0, 0)),     # resident weights
                pl.BlockSpec((in_cols, acc_cols), lambda i: (0, 0)),     # resident weights
            ],
            out_specs=pl.BlockSpec((block_rows, out_cols), lambda i: (i, 0)),
        ),
        compiler_params=pltpu.CompilerParams(
            dimension_semantics=("parallel",),
            vmem_limit_bytes=vmem_limit,
        ),
    )(xu_g, xv_g, r0, r1)

    out = out_g.reshape(n_pad, c_out)               # free bitcast back to row-major
    if n_pad != n:
        out = out[:n]                               # only when N wasn't g-aligned
    return out


# --------------------------- reference & demo ---------------------------------

def _reference(x_u, x_v, weight, symmetric):
    out = jnp.tanh(jnp.concatenate([x_u, x_v], axis=1) @ weight.T)
    if symmetric:
        out = out * jnp.tanh(jnp.concatenate([x_v, x_u], axis=1) @ weight.T)
    return out


if __name__ == "__main__":
    C_IN, C_OUT = 8, 8
    key = jax.random.PRNGKey(0)
    k_u, k_v, k_w = jax.random.split(key, 3)
    # nn.Linear(2*C_IN, C_OUT, bias=False) weight: [C_OUT, 2*C_IN]
    weight = jax.random.normal(k_w, (C_OUT, 2 * C_IN), dtype=jnp.float32) * 0.1

    # 1) g-aligned N (zero-copy fast path), symmetric, default tiling.
    N = 1024
    x_u = jax.random.normal(k_u, (N, C_IN), dtype=jnp.float32)
    x_v = jax.random.normal(k_v, (N, C_IN), dtype=jnp.float32)
    ref_sym = _reference(x_u, x_v, weight, True)
    ref_asym = _reference(x_u, x_v, weight, False)

    out1 = jax.block_until_ready(
        diagonal_edge_weight_builder(x_u, x_v, weight, symmetric=True))
    assert out1.shape == (N, C_OUT)
    assert jnp.allclose(out1, ref_sym, atol=1e-5, rtol=1e-5), "mismatch (sym)"

    # 2) Non-symmetric, explicit small tile -> multi-step grid.
    out2 = jax.block_until_ready(
        diagonal_edge_weight_builder(x_u, x_v, weight, symmetric=False,
                                     block_edges=256))
    assert jnp.allclose(out2, ref_asym, atol=1e-5, rtol=1e-5), "mismatch (asym)"

    # 3) N not a multiple of the group factor (pad fallback + masked last block).
    N2 = 1000
    x_u2, x_v2 = x_u[:N2], x_v[:N2]
    ref2 = _reference(x_u2, x_v2, weight, True)
    out3 = jax.block_until_ready(
        diagonal_edge_weight_builder(x_u2, x_v2, weight, symmetric=True))
    assert out3.shape == (N2, C_OUT)
    assert jnp.allclose(out3, ref2, atol=1e-5, rtol=1e-5), "mismatch (sym, ragged N)"

    # 4) bf16 matmul + bf16 tanh (v6e/v7x EUP path), symmetric, loose tolerance.
    out4 = jax.block_until_ready(
        diagonal_edge_weight_builder(x_u, x_v, weight, symmetric=True,
                                     compute_dtype=jnp.bfloat16,
                                     tanh_dtype=jnp.bfloat16))
    assert jnp.allclose(out4, ref_sym, atol=3e-2, rtol=3e-2), "mismatch (sym, bf16)"

    print("KERNEL_OK")
</pallas_src>

<mosaic_0001>
module attributes {stable_mosaic.version = 11 : i64} {
  func.func @_edge_kernel(%arg0: i32, %arg1: memref<8x128xf32, #tpu.memory_space<vmem>>, %arg2: memref<8x128xf32, #tpu.memory_space<vmem>>, %arg3: memref<128x256xf32, #tpu.memory_space<vmem>>, %arg4: memref<128x256xf32, #tpu.memory_space<vmem>>, %arg5: memref<8x128xf32, #tpu.memory_space<vmem>>) attributes {dimension_semantics = [#tpu.dimension_semantics<parallel>], iteration_bounds = array<i64: 8>, scalar_prefetch = 0 : i64, scratch_operands = 0 : i64, tpu.core_type = #tpu.core_type<tc>, window_params = [{transform_indices = @transform_0, window_bounds = array<i64: 8, 128>}, {transform_indices = @transform_1, window_bounds = array<i64: 8, 128>}, {pipeline_mode = #tpu.pipeline_mode<synchronous>, transform_indices = @transform_2, window_bounds = array<i64: 128, 256>}, {pipeline_mode = #tpu.pipeline_mode<synchronous>, transform_indices = @transform_3, window_bounds = array<i64: 128, 256>}, {transform_indices = @transform_4, window_bounds = array<i64: 8, 128>}]} {
    %c0 = arith.constant 0 : index
    %c0_0 = arith.constant 0 : index
    %0 = vector.load %arg1[%c0, %c0_0] : memref<8x128xf32, #tpu.memory_space<vmem>>, vector<8x128xf32>
    %c0_1 = arith.constant 0 : index
    %c0_2 = arith.constant 0 : index
    %1 = vector.load %arg2[%c0_1, %c0_2] : memref<8x128xf32, #tpu.memory_space<vmem>>, vector<8x128xf32>
    %c0_3 = arith.constant 0 : index
    %c0_4 = arith.constant 0 : index
    %2 = vector.load %arg3[%c0_3, %c0_4] : memref<128x256xf32, #tpu.memory_space<vmem>>, vector<128x256xf32>
    %c0_5 = arith.constant 0 : index
    %c0_6 = arith.constant 0 : index
    %3 = vector.load %arg4[%c0_5, %c0_6] : memref<128x256xf32, #tpu.memory_space<vmem>>, vector<128x256xf32>
    %cst = arith.constant dense<0.000000e+00> : vector<8x256xf32>
    %4 = tpu.matmul %0, %2, %cst {dimension_numbers = #tpu.dot_dimension_numbers<[1], [0], [0], [1], [0, 0, 1, 1], [], []>} : vector<8x128xf32>, vector<128x256xf32>, vector<8x256xf32> -> vector<8x256xf32>
    %cst_7 = arith.constant dense<0.000000e+00> : vector<8x256xf32>
    %5 = tpu.matmul %1, %3, %cst_7 {dimension_numbers = #tpu.dot_dimension_numbers<[1], [0], [0], [1], [0, 0, 1, 1], [], []>} : vector<8x128xf32>, vector<128x256xf32>, vector<8x256xf32> -> vector<8x256xf32>
    %6 = arith.addf %4, %5 : vector<8x256xf32>
    %7 = math.tanh %6 : vector<8x256xf32>
    %8 = vector.extract_strided_slice %7 {offsets = [0, 0], sizes = [8, 128], strides = [1, 1]} : vector<8x256xf32> to vector<8x128xf32>
    %9 = vector.extract_strided_slice %7 {offsets = [0, 128], sizes = [8, 128], strides = [1, 1]} : vector<8x256xf32> to vector<8x128xf32>
    %10 = arith.mulf %8, %9 : vector<8x128xf32>
    %c0_8 = arith.constant 0 : index
    %c0_9 = arith.constant 0 : index
    %11 = vector.load %arg5[%c0_8, %c0_9] : memref<8x128xf32, #tpu.memory_space<vmem>>, vector<8x128xf32>
    tpu.vector_store %arg5[%c0_8, %c0_9], %10 {strides = array<i32>} : memref<8x128xf32, #tpu.memory_space<vmem>>, vector<8x128xf32>,
    return
  }
  func.func @transform_0(%arg0: i32) -> (i32, i32) {
    %c0_i32 = arith.constant 0 : i32
    %c0_i32_0 = arith.constant 0 : i32
    return %arg0, %c0_i32 : i32, i32
  }
  func.func @transform_1(%arg0: i32) -> (i32, i32) {
    %c0_i32 = arith.constant 0 : i32
    %c0_i32_0 = arith.constant 0 : i32
    return %arg0, %c0_i32 : i32, i32
  }
  func.func @transform_2(%arg0: i32) -> (i32, i32) {
    %c0_i32 = arith.constant 0 : i32
    %c0_i32_0 = arith.constant 0 : i32
    %c0_i32_1 = arith.constant 0 : i32
    return %c0_i32, %c0_i32_0 : i32, i32
  }
  func.func @transform_3(%arg0: i32) -> (i32, i32) {
    %c0_i32 = arith.constant 0 : i32
    %c0_i32_0 = arith.constant 0 : i32
    %c0_i32_1 = arith.constant 0 : i32
    return %c0_i32, %c0_i32_0 : i32, i32
  }
  func.func @transform_4(%arg0: i32) -> (i32, i32) {
    %c0_i32 = arith.constant 0 : i32
    %c0_i32_0 = arith.constant 0 : i32
    return %arg0, %c0_i32 : i32, i32
  }
}

</mosaic_0001>

<bundles_post_ra>
// kernel: tpu_custom_call.1
= control target key start
LH: loop header
LB: loop body
LE: loop exit
PB: predicated region body
PF: predicated region fallthrough
CT: control target
= control target key end

     0   :  { %s1279_s0 = inlined_call_operand.hbm [shape: f32[64,128], index: 0, kind: input, shape index: {}]   ;;  %s1280_s1 = inlined_call_operand.hbm [shape: f32[64,128], index: 1, kind: input, shape index: {}]   ;;  %s1281_s2 = inlined_call_operand.hbm [shape: f32[128,256], index: 2, kind: input, shape index: {}]   ;;  %s1282_s3 = inlined_call_operand.hbm [shape: f32[128,256], index: 3, kind: input, shape index: {}]   ;;  %s1283_s4 = inlined_call_operand.hbm [shape: f32[64,128], index: 4, kind: output, shape index: {}]  }
   0x1   :  { %1288 = sst [smem:[#allocation16_spill]] %s1281_s2 }
   0x2   :  { %9 = vsyncpa [#allocation3], 0 }
   0x3   :  { %11 = vsyncpa [#allocation3 + $0x1], 0 }
   0x4   :  { %12 = vsyncpa [#allocation6], 0 }
   0x5   :  { %14 = vsyncpa [#allocation6 + $0x1], 0 }
   0x6   :  { %15 = vsyncpa [#allocation9], 0 }
   0x7   :  { %16 = vsyncpa [#allocation4], 0 }
   0x8   :  { %18 = vsyncpa [#allocation4 + $0x1], 0  ;;  %s1010_s15 = smov 0   ;;  %s1012_s16 = smov 0  }
   0x9   :  { %s1014_s17 = smov 0   ;;  %s1016_s18 = smov 0  }
   0xa LB: > { %s1031_s19 = sadd.s32 4294967295, %s975_s18   ;;  %s617_s20 = sadd.s32 4294967294, %s975_s18   ;;  %s975_s18 = sphi %s1016_s18, %s1308_s18   ;;  %s971_s17 = sphi %s1014_s17, %s1307_s17   ;;  %s967_s16 = sphi %s1012_s16, %s1306_s16   ;;  %s963_s15 = sphi %s1010_s15, %s1305_s15  }
   0xb   : > { %p44_p0 = scmp.ne.s32.totalorder %s967_s16, %s963_s15  ;;  %p1284_p1 = scmp.eq.s32.totalorder %s1031_s19, 0 }
   0xc   : > { %p142_p3 = scmp.eq.s32.totalorder %s617_s20, 7  ;;  %p618_p5 = scmp.ge.s32.totalorder %s975_s18, 1 }
   0xd   : > { %p1040_p4 = por %p1284_p1, %p44_p0  ;;  %p149_p7 = scmp.lt.s32.totalorder %s975_s18, 9 }
   0xe   : > { %p1045_p6 = por %p142_p3, %p44_p0  ;;  %s977_s24 = smov [#allocation7]  }
   0xf   : > { %s1289_s21 = scalar_select %p1040_p4, 1, 0 }
  0x10   : > { %s1290_s22 = scalar_select %p1045_p6, 1, 0 }
  0x11   : > { %p1050_p8 = pnand %p618_p5, %p149_p7  ;;  %s161_s25 = sshll.u32 %s977_s24, 4  ;;  %s162_s25 = int_to_ptr.vmem [resolvable:$true] %s161_s25 }
  0x12   : > { %s978_s27 = smov [#allocation8]   ;;  %s1293_s2 = sld [smem:[#allocation16_spill]] }
  0x13   : > { %s1291_s23 = scalar_select %p1050_p8, 1, 0 }
  0x14   : > { %p716_p9 = pneg %p1050_p8  ;;  %s174_s28 = sshll.u32 %s978_s27, 4  ;;  %s1062_s28 = int_to_ptr.vmem [resolvable:$true] %s174_s28 }
  0x16   : > { %p1058_p10 = pnand %p716_p9, %p1284_p1 }
  0x18   : > { %s781_s5 = scalar_lea.hbm %s1293_s2, 4096  ;;  %p783_p12 = pneg %p1058_p10 }
  0x19   : > { %p782_p11 = scmp.ne.s32.totalorder %s1293_s2, %s781_s5  ;;  %p788_p3 = scmp.lt.u32.totalorder %s781_s5, %s1293_s2 }
  0x1b   : > { %p784_p13 = pnand %p783_p12, %p782_p11 }
  0x1d   : > { %p785_p0 = pneg %p784_p13 }
  0x1f   : > { %p790_p5 = pnand %p788_p3, %p785_p0 }
  0x21   : > { %793 = shalt.err (!%p790_p5)
}
  0x22   : > { %s794_s10 = scalar_lea.vmem %s162_s25, 4096  ;;  %p802_p2 = scmp.lt.s32.totalorder %s162_s25, %s162_s25 }
  0x23   : > { %p795_p7 = scmp.ne.s32.totalorder %s162_s25, %s794_s10  ;;  %p803_p6 = scmp.lt.s32.totalorder %s794_s10, %s794_s10 }
  0x25   : > { %p797_p9 = pnand %p795_p7, %p783_p12  ;;  %p804_p4 = por %p803_p6, %p802_p2 }
  0x27   : > { %p798_p1 = pneg %p797_p9 }
  0x29   : > { %p805_p8 = pnand %p804_p4, %p798_p1 }
  0x2b   : > { %808 = shalt.err (!%p805_p8)
}
  0x2c   : > { %s979_s11 = smov 256   ;;  %s980_s12 = smov 16  }
  0x2d   : > { %719 = dma.hbm_to_vmem [thread:$0]  (!%p1058_p10), %s1293_s2, 4096, %s162_s25, [#allocation6], %s979_s11, %s979_s11, %s980_s12  }
  0x2e   : > { %s809_s27 = scalar_lea.hbm %s1282_s3, 4096 }
  0x2f   : > { %p810_p11 = scmp.ne.s32.totalorder %s1282_s3, %s809_s27  ;;  %p816_p4 = scmp.lt.u32.totalorder %s809_s27, %s1282_s3 }
  0x31   : > { %p812_p1 = pnand %p810_p11, %p783_p12 }
  0x33   : > { %p813_p2 = pneg %p812_p1 }
  0x35   : > { %p818_p6 = pnand %p816_p4, %p813_p2 }
  0x37   : > { %821 = shalt.err (!%p818_p6)
}
  0x38   : > { %s822_s25 = scalar_lea.vmem %s1062_s28, 4096  ;;  %p830_p3 = scmp.lt.s32.totalorder %s1062_s28, %s1062_s28 }
  0x39   : > { %p823_p8 = scmp.ne.s32.totalorder %s1062_s28, %s822_s25  ;;  %p831_p5 = scmp.lt.s32.totalorder %s822_s25, %s822_s25 }
  0x3b   : > { %p825_p13 = pnand %p823_p8, %p783_p12  ;;  %p832_p7 = por %p831_p5, %p830_p3 }
  0x3d   : > { %p826_p0 = pneg %p825_p13 }
  0x3f   : > { %p833_p9 = pnand %p832_p7, %p826_p0 }
  0x41   : > { %836 = shalt.err (!%p833_p9)
}
  0x42   : > { %722 = dma.hbm_to_vmem [thread:$0]  (!%p1058_p10), %s1282_s3, 4096, %s1062_s28, [#allocation9], %s979_s11, %s979_s11, %s980_s12  }
  0x43   : > { %s1112_s9 = sadd.s32 1, %s975_s18   ;;  %s31_s26 = sadd.s32 1, %s971_s17 }
  0x44   : > { %s28_s10 = ssub.s32 %s975_s18, %s1112_s9  ;;  %p38_p12 = scmp.ne.s32.totalorder %s971_s17, %s967_s16 }
  0x45   : > { %p29_p11 = scmp.eq.s32.totalorder %s28_s10, 0  ;;  %p39_p1 = scmp.eq.s32.totalorder %s975_s18, 0 }
  0x46   : > { %p1294_p2 = scmp.eq.s32.totalorder %s1031_s19, 7  ;;  %p736_p6 = scmp.lt.s32.totalorder %s975_s18, 8 }
  0x47   : > { %s1128_s14 = scalar_select %p29_p11, %s971_s17, %s31_s26  }
  0x48   : > { %p1122_p4 = por %p1294_p2, %p38_p12  ;;  %p40_p8 = por %p39_p1, %p38_p12 }
  0x49   : > { %s188_s20 = sand.u32 1, %s971_s17   ;;  %s623_s11 = sshll.u32 %s975_s18, 7 }
  0x4a   : > { %s1295_s13 = scalar_select %p1122_p4, 1, 0 }
  0x4b   : > { %s1131_s28 = sshll.u32 %s188_s20, 3  ;;  %s1137_s27 = scalar_lea.hbm %s1279_s0, %s623_s11 }
  0x4c   : > { %s192_s29 = scalar_lea.vmem [#allocation2], %s1131_s28  ;;  %p1142_p10 = pnand %p736_p6, %p40_p8 }
  0x4d   : > { %s199_s30 = sshll.u32 %s192_s29, 4  ;;  %s1149_s7 = scalar_lea.hbm %s1280_s1, %s623_s11  ;;  %s1140_s30 = int_to_ptr.vmem [resolvable:$true] %s199_s30 }
  0x4e   : > { %s206_s8 = sand.u32 1, %s975_s18   ;;  %s189_s26 = scalar_lea.sflag [#allocation3], %s188_s20 }
  0x4f   : > { %s837_s10 = scalar_lea.hbm %s1137_s27, 128  ;;  %p839_p0 = pneg %p1142_p10 }
  0x50   : > { %p838_p13 = scmp.ne.s32.totalorder %s1137_s27, %s837_s10  ;;  %s842_s29 = scalar_lea.hbm %s1279_s0, 1024 }
  0x51   : > { %p843_p7 = scmp.lt.u32.totalorder %s1137_s27, %s1279_s0  ;;  %p844_p9 = scmp.lt.u32.totalorder %s842_s29, %s837_s10 }
  0x52   : > { %p840_p3 = pnand %p839_p0, %p838_p13  ;;  %p846_p11 = scmp.lt.u32.totalorder %s837_s10, %s1137_s27 }
  0x53   : > { %p845_p12 = por %p844_p9, %p843_p7 }
  0x54   : > { %p841_p5 = pneg %p840_p3 }
  0x55   : > { %p847_p1 = por %p846_p11, %p845_p12 }
  0x57   : > { %p848_p2 = pnand %p847_p1, %p841_p5 }
  0x59   : > { %851 = shalt.err (!%p848_p2)
}
  0x5a   : > { %s852_s20 = scalar_lea.vmem %s1140_s30, 128  ;;  %s981_s11 = smov [#allocation2]  }
  0x5b   : > { %p853_p6 = scmp.ne.s32.totalorder %s1140_s30, %s852_s20  ;;  %s857_s25 = sshll.u32 %s981_s11, 4  ;;  %s858_s25 = int_to_ptr.vmem [resolvable:$false] %s857_s25 }
  0x5c   : > { %s859_s2 = scalar_lea.vmem %s858_s25, 256  ;;  %p860_p3 = scmp.lt.s32.totalorder %s1140_s30, %s858_s25 }
  0x5d   : > { %p855_p8 = pnand %p853_p6, %p839_p0  ;;  %p861_p7 = scmp.lt.s32.totalorder %s859_s2, %s852_s20 }
  0x5f   : > { %p856_p13 = pneg %p855_p8  ;;  %p862_p9 = por %p861_p7, %p860_p3 }
  0x61   : > { %p863_p12 = pnand %p862_p9, %p856_p13 }
  0x63   : > { %866 = shalt.err (!%p863_p12)
}
  0x64   : > { %726 = dma.hbm_to_vmem [thread:$0]  (!%p1142_p10), %s1137_s27, 128, %s1140_s30, %s189_s26  }
  0x65   : > { %s210_s10 = scalar_lea.vmem [#allocation5], %s1131_s28  ;;  %s207_s24 = scalar_lea.sflag [#allocation6], %s206_s8 }
  0x66   : > { %s217_s12 = sshll.u32 %s210_s10, 4  ;;  %s867_s29 = scalar_lea.hbm %s1149_s7, 128  ;;  %s218_s12 = int_to_ptr.vmem [resolvable:$true] %s217_s12 }
  0x67   : > { %p868_p5 = scmp.ne.s32.totalorder %s1149_s7, %s867_s29  ;;  %s872_s11 = scalar_lea.hbm %s1280_s1, 1024 }
  0x68   : > { %p873_p2 = scmp.lt.u32.totalorder %s1149_s7, %s1280_s1  ;;  %p874_p6 = scmp.lt.u32.totalorder %s872_s11, %s867_s29 }
  0x69   : > { %p870_p11 = pnand %p868_p5, %p839_p0  ;;  %p876_p13 = scmp.lt.u32.totalorder %s867_s29, %s1149_s7 }
  0x6a   : > { %p875_p8 = por %p874_p6, %p873_p2 }
  0x6b   : > { %p871_p1 = pneg %p870_p11 }
  0x6c   : > { %p877_p3 = por %p876_p13, %p875_p8 }
  0x6e   : > { %p878_p7 = pnand %p877_p3, %p871_p1 }
  0x70   : > { %881 = shalt.err (!%p878_p7)
}
  0x71   : > { %s882_s28 = scalar_lea.vmem %s218_s12, 128  ;;  %s982_s27 = smov [#allocation5]  }
  0x72   : > { %p883_p9 = scmp.ne.s32.totalorder %s218_s12, %s882_s28  ;;  %s887_s30 = sshll.u32 %s982_s27, 4  ;;  %s888_s30 = int_to_ptr.vmem [resolvable:$false] %s887_s30 }
  0x73   : > { %s889_s8 = scalar_lea.vmem %s888_s30, 256  ;;  %p890_p11 = scmp.lt.s32.totalorder %s218_s12, %s888_s30 }
  0x74   : > { %p885_p12 = pnand %p883_p9, %p839_p0  ;;  %p891_p4 = scmp.lt.s32.totalorder %s889_s8, %s882_s28 }
  0x76   : > { %p886_p5 = pneg %p885_p12  ;;  %p892_p2 = por %p891_p4, %p890_p11 }
  0x78   : > { %p893_p6 = pnand %p892_p2, %p886_p5 }
  0x7a   : > { %896 = shalt.err (!%p893_p6)
}
  0x7b   : > { %729 = dma.hbm_to_vmem [thread:$0]  (!%p1142_p10), %s1149_s7, 128, %s218_s12, %s207_s24  }
  0x7c   : > { %p1297_p1 = scmp.ne.s32.totalorder %s1291_s23, 0 }
  0x7d   : > { %s1202_s26 = sand.u32 (!%p1297_p1), 1, %s967_s16   ;;  %p1298_p4 = scmp.ne.s32.totalorder (!%p1297_p1), %s1289_s21, 0 }
  0x7e   : > { %226 = sbr.rel (%p1297_p1) target bundleno = 423 (0x1a7), region = 36  ;;  %s1205_s10 = sshll.u32 (!%p1297_p1), %s1202_s26, 3 }
  0x7f   : > { %s229_s29 = scalar_lea.sflag (!%p1297_p1), [#allocation3], %s1202_s26  ;;  %s232_s6 = scalar_lea.vmem (!%p1297_p1), [#allocation2], %s1205_s10 }
  0x85   : > { %942 = dma.done.wait (%p1298_p4), %s229_s29, 128  }
  0x86   : > { %944 = vsyncadd (%p1298_p4), %s229_s29, 4294967168  ;;  %s237_s23 = sand.u32 1, %s1031_s19   ;;  %s241_s7 = scalar_lea.vmem [#allocation5], %s1205_s10 }
  0x87   : > { %s238_s5 = scalar_lea.sflag [#allocation6], %s237_s23 }
  0x88   : > { %946 = dma.done.wait (%p1298_p4), %s238_s5, 128  }
  0x89   : > { %948 = vsyncadd (%p1298_p4), %s238_s5, 4294967168  ;;  %p1299_p10 = scmp.eq.s32.totalorder %s1031_s19, 0 }
  0x8b   : > { %950 = dma.done.wait (%p1299_p10), [#allocation6], 4096   ;;  %p1300_p0 = pmov %p1299_p10 }
  0x8d   : > { %952 = vsyncadd (%p1300_p0), [#allocation6], 4294963200  ;;  %p1301_p8 = pmov %p1300_p0 }
  0x8e   : > { %p1302_p13 = pmov %p1300_p0 }
  0x8f   : > { %954 = dma.done.wait (%p1301_p8), [#allocation9], 4096  }
  0x90   : > { %956 = vsyncadd (%p1302_p13), [#allocation9], 4294963200  ;;  %v983_v0 = vmov 0.0   ;;  %v314_v1 = vld [vmem:[#allocation8 + $0x8] sm:$0xff]  ;;  %v316_v2 = vld [vmem:[#allocation8 + $0x18] sm:$0xff]  ;;  %s633_s21 = sshll.u32 %s1031_s19, 7 }
  0x91   : > { %409 = vmatprep.mubr.f32.mxu1 %v983_v0  ;;  %480 = vmatprep.mubr.f32.mxu0 %v983_v0  ;;  %v282_v3 = vld [vmem:[#allocation7 + $0x8] sm:$0xff]  ;;  %v636_v4 = vpack.c.bf16 %v316_v2, %v314_v1  ;;  %v284_v5 = vld [vmem:[#allocation7 + $0x18] sm:$0xff]  ;;  %v313_v6 = vld [vmem:[#allocation8] sm:$0xff]  ;;  %s278_s12 = scalar_lea.vmem [#allocation10], %s1205_s10  ;;  %s1236_s25 = scalar_lea.hbm %s1283_s4, %s633_s21 }
  0x92   : > { %v315_v7 = vld [vmem:[#allocation8 + $0x10] sm:$0xff]  ;;  %v668_v8 = vpack.c.bf16 %v284_v5, %v282_v3  ;;  %v281_v10 = vld [vmem:[#allocation7] sm:$0xff]  ;;  %v318_v12 = vld [vmem:[#allocation8 + $0x28] sm:$0xff]  ;;  %s505_s24 = sshll.u32 %s278_s12, 4  ;;  %s492_s2 = scalar_lea.sflag [#allocation4], %s1202_s26  ;;  %s1238_s24 = int_to_ptr.vmem [resolvable:$true] %s505_s24 }
  0x93   : > { %v638_v9 = vpack.c.bf16 %v315_v7, %v313_v6  ;;  %v283_v11 = vld [vmem:[#allocation7 + $0x10] sm:$0xff]  ;;  %637 = vmatprep.subr.bf16.mxu1 %v636_v4  ;;  %v320_v14 = vld [vmem:[#allocation8 + $0x38] sm:$0xff]  ;;  %v286_v15 = vld [vmem:[#allocation7 + $0x28] sm:$0xff]  ;;  %s897_s28 = scalar_lea.vmem %s1238_s24, 128  ;;  %p1303_p7 = scmp.ne.s32.totalorder %s1295_s13, 0 }
  0x94   : > { %v670_v13 = vpack.c.bf16 %v283_v11, %v281_v10  ;;  %v288_v16 = vld [vmem:[#allocation7 + $0x38] sm:$0xff]  ;;  %669 = vmatprep.subr.bf16.mxu0 %v668_v8  ;;  %v640_v17 = vpack.c.bf16 %v320_v14, %v318_v12  ;;  %v317_v19 = vld [vmem:[#allocation8 + $0x20] sm:$0xff]  ;;  %v319_v20 = vld [vmem:[#allocation8 + $0x30] sm:$0xff]  ;;  %p898_p3 = scmp.ne.s32.totalorder %s1238_s24, %s897_s28  ;;  %s984_s19 = smov [#allocation10]  }
  0x95   : > { %639 = vmatpush1.bf16.msra.mxu1 %v638_v9  ;;  %v672_v18 = vpack.c.bf16 %v288_v16, %v286_v15  ;;  %v285_v21 = vld [vmem:[#allocation7 + $0x20] sm:$0xff]  ;;  %v642_v22 = vpack.c.bf16 %v319_v20, %v317_v19  ;;  %v287_v23 = vld [vmem:[#allocation7 + $0x30] sm:$0xff]  ;;  %v322_v24 = vld [vmem:[#allocation8 + $0x48] sm:$0xff]  ;;  %s901_s27 = sshll.u32 %s984_s19, 4  ;;  %s902_s27 = int_to_ptr.vmem [resolvable:$false] %s901_s27 }
  0x96   : > { %671 = vmatpush1.bf16.msra.mxu0 %v670_v13  ;;  %v324_v25 = vld [vmem:[#allocation8 + $0x58] sm:$0xff]  ;;  %641 = vmatprep.subr.bf16.mxu1 %v640_v17  ;;  %v674_v26 = vpack.c.bf16 %v287_v23, %v285_v21  ;;  %v290_v28 = vld [vmem:[#allocation7 + $0x48] sm:$0xff]  ;;  %v321_v30 = vld [vmem:[#allocation8 + $0x40] sm:$0xff]  ;;  %p899_p9 = pnand %p898_p3, %p1303_p7  ;;  %s903_s30 = scalar_lea.vmem %s902_s27, 256 }
  0x97   : > { %673 = vmatprep.subr.bf16.mxu0 %v672_v18  ;;  %v644_v27 = vpack.c.bf16 %v324_v25, %v322_v24  ;;  %v292_v29 = vld [vmem:[#allocation7 + $0x58] sm:$0xff]  ;;  %v323_v32 = vld [vmem:[#allocation8 + $0x50] sm:$0xff]  ;;  %v289_v33 = vld [vmem:[#allocation7 + $0x40] sm:$0xff]  ;;  %p904_p5 = scmp.lt.s32.totalorder %s1238_s24, %s902_s27  ;;  %p905_p11 = scmp.lt.s32.totalorder %s903_s30, %s897_s28 }
  0x98   : > { %v676_v31 = vpack.c.bf16 %v292_v29, %v290_v28  ;;  %v291_v34 = vld [vmem:[#allocation7 + $0x50] sm:$0xff]  ;;  %v646_v35 = vpack.c.bf16 %v323_v32, %v321_v30  ;;  %v326_v36 = vld [vmem:[#allocation8 + $0x68] sm:$0xff]  ;;  %v328_v37 = vld [vmem:[#allocation8 + $0x78] sm:$0xff]  ;;  %p900_p12 = pneg %p899_p9 }
  0x99   : > { %643 = vmatpush1.bf16.msra.mxu1 %v642_v22  ;;  %v294_v38 = vld [vmem:[#allocation7 + $0x68] sm:$0xff]  ;;  %v678_v39 = vpack.c.bf16 %v291_v34, %v289_v33  ;;  %v648_v40 = vpack.c.bf16 %v328_v37, %v326_v36  ;;  %v296_v41 = vld [vmem:[#allocation7 + $0x78] sm:$0xff]  ;;  %v325_v42 = vld [vmem:[#allocation8 + $0x60] sm:$0xff]  ;;  %p906_p2 = por %p905_p11, %p904_p5 }
  0x9a   : > { %675 = vmatpush1.bf16.msra.mxu0 %v674_v26  ;;  %645 = vmatprep.subr.bf16.mxu1 %v644_v27  ;;  %v327_v43 = vld [vmem:[#allocation8 + $0x70] sm:$0xff]  ;;  %v680_v44 = vpack.c.bf16 %v296_v41, %v294_v38  ;;  %v293_v45 = vld [vmem:[#allocation7 + $0x60] sm:$0xff]  ;;  %v330_v47 = vld [vmem:[#allocation8 + $0x88] sm:$0xff] }
  0x9b   : > { %677 = vmatprep.subr.bf16.mxu0 %v676_v31  ;;  %v295_v46 = vld [vmem:[#allocation7 + $0x70] sm:$0xff]  ;;  %v332_v48 = vld [vmem:[#allocation8 + $0x98] sm:$0xff]  ;;  %v298_v49 = vld [vmem:[#allocation7 + $0x88] sm:$0xff]  ;;  %v650_v51 = vpack.c.bf16 %v327_v43, %v325_v42  ;;  %p907_p6 = pnand %p906_p2, %p900_p12 }
  0x9c   : > { %v300_v50 = vld [vmem:[#allocation7 + $0x98] sm:$0xff]  ;;  %v682_v52 = vpack.c.bf16 %v295_v46, %v293_v45  ;;  %v652_v53 = vpack.c.bf16 %v332_v48, %v330_v47  ;;  %v329_v54 = vld [vmem:[#allocation8 + $0x80] sm:$0xff]  ;;  %v331_v55 = vld [vmem:[#allocation8 + $0x90] sm:$0xff] }
  0x9d   : > { %647 = vmatpush1.bf16.msra.mxu1 %v646_v35  ;;  %v297_v56 = vld [vmem:[#allocation7 + $0x80] sm:$0xff]  ;;  %v684_v57 = vpack.c.bf16 %v300_v50, %v298_v49  ;;  %v299_v58 = vld [vmem:[#allocation7 + $0x90] sm:$0xff]  ;;  %v334_v59 = vld [vmem:[#allocation8 + $0xa8] sm:$0xff]  ;;  %v654_v63 = vpack.c.bf16 %v331_v55, %v329_v54 }
  0x9e   : > { %679 = vmatpush1.bf16.msra.mxu0 %v678_v39  ;;  %649 = vmatprep.subr.bf16.mxu1 %v648_v40  ;;  %v336_v60 = vld [vmem:[#allocation8 + $0xb8] sm:$0xff]  ;;  %v302_v61 = vld [vmem:[#allocation7 + $0xa8] sm:$0xff]  ;;  %v686_v0 = vpack.c.bf16 %v299_v58, %v297_v56  ;;  %v333_v2 = vld [vmem:[#allocation8 + $0xa0] sm:$0xff] }
  0x9f   : > { %681 = vmatprep.subr.bf16.mxu0 %v680_v44  ;;  %v304_v62 = vld [vmem:[#allocation7 + $0xb8] sm:$0xff]  ;;  %v656_v1 = vpack.c.bf16 %v336_v60, %v334_v59  ;;  %v335_v3 = vld [vmem:[#allocation8 + $0xb0] sm:$0xff]  ;;  %v301_v4 = vld [vmem:[#allocation7 + $0xa0] sm:$0xff] }
  0xa0   : > { %v688_v5 = vpack.c.bf16 %v304_v62, %v302_v61  ;;  %v303_v6 = vld [vmem:[#allocation7 + $0xb0] sm:$0xff]  ;;  %v338_v7 = vld [vmem:[#allocation8 + $0xc8] sm:$0xff]  ;;  %v340_v8 = vld [vmem:[#allocation8 + $0xd8] sm:$0xff]  ;;  %v658_v11 = vpack.c.bf16 %v335_v3, %v333_v2 }
  0xa1   : > { %651 = vmatpush1.bf16.msra.mxu1 %v650_v51  ;;  %v306_v9 = vld [vmem:[#allocation7 + $0xc8] sm:$0xff]  ;;  %v308_v10 = vld [vmem:[#allocation7 + $0xd8] sm:$0xff]  ;;  %v690_v12 = vpack.c.bf16 %v303_v6, %v301_v4  ;;  %v660_v13 = vpack.c.bf16 %v340_v8, %v338_v7  ;;  %v337_v14 = vld [vmem:[#allocation8 + $0xc0] sm:$0xff] }
  0xa2   : > { %683 = vmatpush1.bf16.msra.mxu0 %v682_v52  ;;  %653 = vmatprep.subr.bf16.mxu1 %v652_v53  ;;  %v339_v15 = vld [vmem:[#allocation8 + $0xd0] sm:$0xff]  ;;  %v305_v16 = vld [vmem:[#allocation7 + $0xc0] sm:$0xff]  ;;  %v692_v17 = vpack.c.bf16 %v308_v10, %v306_v9  ;;  %v342_v19 = vld [vmem:[#allocation8 + $0xe8] sm:$0xff] }
  0xa3   : > { %685 = vmatprep.subr.bf16.mxu0 %v684_v57  ;;  %v307_v18 = vld [vmem:[#allocation7 + $0xd0] sm:$0xff]  ;;  %v344_v20 = vld [vmem:[#allocation8 + $0xf8] sm:$0xff]  ;;  %v310_v21 = vld [vmem:[#allocation7 + $0xe8] sm:$0xff]  ;;  %v662_v23 = vpack.c.bf16 %v339_v15, %v337_v14 }
  0xa4   : > { %v312_v22 = vld [vmem:[#allocation7 + $0xf8] sm:$0xff]  ;;  %v694_v24 = vpack.c.bf16 %v307_v18, %v305_v16  ;;  %v664_v25 = vpack.c.bf16 %v344_v20, %v342_v19  ;;  %v341_v26 = vld [vmem:[#allocation8 + $0xe0] sm:$0xff]  ;;  %v343_v27 = vld [vmem:[#allocation8 + $0xf0] sm:$0xff] }
  0xa5   : > { %655 = vmatpush1.bf16.msra.mxu1 %v654_v63  ;;  %v696_v28 = vpack.c.bf16 %v312_v22, %v310_v21  ;;  %v309_v29 = vld [vmem:[#allocation7 + $0xe0] sm:$0xff]  ;;  %v311_v30 = vld [vmem:[#allocation7 + $0xf0] sm:$0xff]  ;;  %v666_v31 = vpack.c.bf16 %v343_v27, %v341_v26 }
  0xa6   : > { %687 = vmatpush1.bf16.msra.mxu0 %v686_v0  ;;  %657 = vmatprep.subr.bf16.mxu1 %v656_v1  ;;  %v698_v32 = vpack.c.bf16 %v311_v30, %v309_v29  ;;  %v280_v33 = vld [vmem:[%s241_s7] sm:$0xff]  ;;  %v279_v34 = vld [vmem:[%s232_s6] sm:$0xff] }
  0xa7   : > { %689 = vmatprep.subr.bf16.mxu0 %v688_v5 }
  0xa9   : > { %659 = vmatpush1.bf16.msra.mxu1 %v658_v11 }
  0xaa   : > { %691 = vmatpush1.bf16.msra.mxu0 %v690_v12  ;;  %661 = vmatprep.subr.bf16.mxu1 %v660_v13 }
  0xab   : > { %693 = vmatprep.subr.bf16.mxu0 %v692_v17 }
  0xad   : > { %663 = vmatpush1.bf16.msra.mxu1 %v662_v23 }
  0xae   : > { %695 = vmatpush1.bf16.msra.mxu0 %v694_v24  ;;  %665 = vmatprep.subr.bf16.mxu1 %v664_v25 }
  0xaf   : > { %697 = vmatprep.subr.bf16.mxu0 %v696_v28 }
  0xb1   : > { %667 = vmatpush1.bf16.msra.mxu1 %v666_v31 }
  0xb2   : > { %699 = vmatpush1.bf16.msra.mxu0 %v698_v32 }
  0xb4   : > { %410 = vmatmul.mubr.f32.vlgmr.msra.gmra.mrb[0].mxu1 %v280_v33 }
  0xb5   : > { %481 = vmatmul.mubr.f32.vlgmr.msra.gmra.mrb[0].mxu0 %v279_v34 }
 0x187   : > { %v411_v35 = vpop.f32.mrb[0].mxu1 }
 0x188   : > { %v482_v36 = vpop.f32.mrb[0].mxu0  ;;  %v413_v37 = vpop.f32.mrb[1].mxu1 }
 0x189   : > { %v483_v38 = vadd.f32 %v482_v36, %v411_v35  ;;  %v484_v39 = vpop.f32.mrb[1].mxu0 }
 0x18a   : > { %v485_v40 = vadd.f32 %v484_v39, %v413_v37 }
 0x18b   : > { %777 = vtanh.f32 %v483_v38 }
 0x18c   : > { %779 = vtanh.f32 %v485_v40 }
 0x195   : > { %v778_v41 = vpop.eup %777 }
 0x196   : > { %v780_v42 = vpop.eup %779 }
 0x197   : > { %v489_v43 = vmul.f32 %v780_v42, %v778_v41 }
 0x199   : > { %490 = vst [vmem:[%s278_s12] sm:$0xff] %v489_v43 }
 0x19a   : > { %910 = shalt.err (!%p907_p6)
}
 0x19b   : > { %s911_s8 = scalar_lea.hbm %s1236_s25, 128  ;;  %s915_s29 = scalar_lea.hbm %s1283_s4, 1024 }
 0x19c   : > { %p912_p1 = scmp.ne.s32.totalorder %s1236_s25, %s911_s8  ;;  %p916_p0 = scmp.lt.u32.totalorder %s1236_s25, %s1283_s4 }
 0x19d   : > { %p917_p8 = scmp.lt.u32.totalorder %s915_s29, %s911_s8  ;;  %p919_p3 = scmp.lt.u32.totalorder %s911_s8, %s1236_s25 }
 0x19e   : > { %p913_p4 = pnand %p912_p1, %p1303_p7 }
 0x19f   : > { %p918_p13 = por %p917_p8, %p916_p0 }
 0x1a0   : > { %p914_p10 = pneg %p913_p4 }
 0x1a1   : > { %p920_p9 = por %p919_p3, %p918_p13 }
 0x1a3   : > { %p921_p12 = pnand %p920_p9, %p914_p10 }
 0x1a5   : > { %924 = shalt.err (!%p921_p12)
}
 0x1a6   : > { %714 = dma.vmem_to_hbm [thread:$0]  (%p1303_p7), %s1238_s24, 128, %s1236_s25, %s492_s2  }
 0x1a7 PF: > { %p739_p5 = scmp.ge.s32.totalorder %s975_s18, 2  ;;  %s517_s5 = sand.u32 1, %s963_s15  }
 0x1a8   : > { %p1304_p11 = scmp.ne.s32.totalorder %s1290_s22, 0  ;;  %s518_s7 = scalar_lea.sflag [#allocation4], %s517_s5 }
 0x1aa   : > { %p731_p2 = pnand %p739_p5, %p1304_p11 }
 0x1ac   : > { %958 = dma.done.wait (!%p731_p2), %s518_s7, 128  }
 0x1ad   : > { %960 = vsyncadd (!%p731_p2), %s518_s7, 4294967168  ;;  %p21_p6 = scmp.ge.s32.totalorder %s1112_s9, 10   ;;  %s1305_s15 = smov %s967_s16 }
 0x1ae   : > { %s1306_s16 = smov %s971_s17  ;;  %s1307_s17 = smov %s1128_s14 }
 0x1af   : > { %s1308_s18 = smov %s1112_s9  ;;  %23 = sbr.rel (!%p21_p6) target bundleno = 10 (0xa), region = 102 }
 0x1b6   :  { %523 = vsyncpa [#allocation3], 1 }
 0x1b7   :  { %525 = vsyncpa [#allocation3 + $0x1], 1 }
 0x1b8   :  { %526 = vsyncpa [#allocation6], 1 }
 0x1b9   :  { %528 = vsyncpa [#allocation6 + $0x1], 1 }
 0x1ba   :  { %529 = vsyncpa [#allocation9], 1 }
 0x1bb   :  { %530 = vsyncpa [#allocation4], 1 }
 0x1bc   :  { %532 = vsyncpa [#allocation4 + $0x1], 1 }

</bundles_post_ra>
